<compile_context>
chip_gen: v7x
topology: tpu7x:2x2x1
jax: 0.10.0
libtpu: 0.0.40
codegen_flags: <defaults>
</compile_context>

<pallas_src>
import functools

import numpy as np
import jax
import jax.numpy as jnp
from jax import lax
from jax.experimental import pallas as pl
from jax.experimental.pallas import tpu as pltpu


# ----------------------------------------------------------------------------
# Pass 1: seed placement + separable block dilation -> keep/distort pattern.
# ----------------------------------------------------------------------------
def _pattern_kernel(u_ref, pat_ref, *, block_size, seed_drop_rate):
    """Tile layout (H, W, nc_tile): H = leading rows, W = sublanes, channels =
    lanes.  Dilation shifts are row-offset / sublane slices of register-
    resident values; no padded VMEM scratch and no lane crossing."""
    H, W, _ = u_ref.shape
    f32 = jnp.float32
    k = block_size
    lo = k // 2              # top/left reach of the pooling window
    ub = (k - 1) // 2        # bottom/right reach

    # valid block-center region (matches Disout.valid_block_center)
    h_idx = lax.broadcasted_iota(jnp.int32, (H, W, 1), 0)
    w_idx = lax.broadcasted_iota(jnp.int32, (H, W, 1), 1)
    valid = ((h_idx >= lo) & (h_idx < H - ub) &
             (w_idx >= lo) & (w_idx < W - ub))

    u = u_ref[...]
    seeds = jnp.where(valid & (u < seed_drop_rate), 1.0, 0.0).astype(f32)

    # Separable dilation: count seeds inside each k x k window with 2*k shifted
    # adds (zero padding held in registers) == -max_pool2d(-pattern, k, 1, k//2).
    # TODO(synk): the block_size == H == W "min over the whole map" special case
    # of Disout is not implemented (block_size < H, W here).
    def shift_sum(a, axis):
        parts = []
        if lo:
            shape = list(a.shape); shape[axis] = lo
            parts.append(jnp.zeros(shape, f32))
        parts.append(a)
        if ub:
            shape = list(a.shape); shape[axis] = ub
            parts.append(jnp.zeros(shape, f32))
        padded = jnp.concatenate(parts, axis=axis) if len(parts) > 1 else a
        n = a.shape[axis]
        acc = lax.slice_in_dim(padded, 0, n, axis=axis)
        for d in range(1, k):
            acc = acc + lax.slice_in_dim(padded, d, d + n, axis=axis)
        return acc

    cnt = shift_sum(shift_sum(seeds, axis=1), axis=0)   # W (sublane), then H (rows)
    pat_ref[...] = (cnt < 0.5).astype(pat_ref.dtype)    # 1 = keep, 0 = distort


# ----------------------------------------------------------------------------
# Pass 2: blend + fused global rescale (scalars come from SMEM via prefetch).
# ----------------------------------------------------------------------------
def _apply_kernel(scalars_ref, x_ref, pat_ref, g_ref, o_ref):
    inv_p = scalars_ref[0]        # 1 / percent_ones        (global scalar)
    dist_scale = scalars_ref[1]   # alpha * 0.01 * std(x)   (global scalar)
    x = x_ref[...].astype(jnp.float32)
    keep = pat_ref[...] > 0.5
    dist = g_ref[...] * dist_scale
    o_ref[...] = (jnp.where(keep, x, dist) * inv_p).astype(o_ref.dtype)


def _choose_nc_tile(nc, h, w, itemsize=4, budget_bytes=2 * 1024 * 1024):
    """Largest NC-tile that divides NC, is lane-aligned (multiple of 128) when
    possible, and keeps one (H, W, tile) f32 block under `budget_bytes` so both
    passes (double-buffered inputs/outputs + a handful of register temporaries)
    stay well inside scoped VMEM on v5e/v6e/v7x."""
    per_channel = h * w * itemsize
    candidates = [c for c in range(128, nc + 1, 128) if nc % c == 0]
    candidates.append(nc)                       # full dim is always legal
    fitting = [c for c in candidates if c * per_channel <= budget_bytes]
    if fitting:
        return max(fitting)
    return min(candidates)                      # correctness first if nothing fits


def _disout_apply(x_nchw, u_hwc, g_hwc, *, dist_prob, block_size, alpha):
    """Disout forward given pre-drawn uniforms `u_hwc` and normals `g_hwc`
    (both laid out as (H, W, N*C))."""
    N, C, H, W = x_nchw.shape
    NC = N * C
    k = int(block_size)
    # seed_drop_rate exactly as in Disout.forward (static python scalar).
    seed_drop_rate = (float(dist_prob) * (W * H) / (k ** 2)
                      / ((W - k + 1) * (H - k + 1)))

    # lane-dense layout: channels on the lane axis, full H/W per tile.
    x_hwc = jnp.transpose(x_nchw.reshape(NC, H, W), (1, 2, 0))

    nc_tile = _choose_nc_tile(NC, H, W)
    n_tiles = NC // nc_tile
    cparams = pltpu.CompilerParams(
        dimension_semantics=("parallel",),
        vmem_limit_bytes=32 * 1024 * 1024)

    # ---------------- pass 1: keep/distort pattern --------------------------
    pattern = pl.pallas_call(
        functools.partial(_pattern_kernel, block_size=k,
                          seed_drop_rate=seed_drop_rate),
        out_shape=jax.ShapeDtypeStruct((H, W, NC), jnp.float32),
        grid_spec=pltpu.PrefetchScalarGridSpec(
            num_scalar_prefetch=0,
            grid=(n_tiles,),
            in_specs=[pl.BlockSpec((H, W, nc_tile), lambda i: (0, 0, i))],
            out_specs=pl.BlockSpec((H, W, nc_tile), lambda i: (0, 0, i)),
        ),
        compiler_params=cparams,
    )(u_hwc)

    # ------------- global statistics (hoisted out of the kernels) -----------
    numel = float(NC * H * W)
    percent_ones = jnp.sum(pattern) / numel                 # realized keep frac
    var = jnp.var(x_nchw.astype(jnp.float32), ddof=1)       # torch.var (unbiased)
    dist_scale = float(alpha) * 0.01 * jnp.sqrt(var)
    inv_p = 1.0 / jnp.maximum(percent_ones, 1e-6)           # clamp: no inf/NaN
    scalars = jnp.stack([inv_p, dist_scale]).astype(jnp.float32)

    # ---------------- pass 2: blend + rescale --------------------------------
    out_hwc = pl.pallas_call(
        _apply_kernel,
        out_shape=jax.ShapeDtypeStruct((H, W, NC), x_nchw.dtype),
        grid_spec=pltpu.PrefetchScalarGridSpec(
            num_scalar_prefetch=1,
            grid=(n_tiles,),
            in_specs=[pl.BlockSpec((H, W, nc_tile), lambda i, s: (0, 0, i)),
                      pl.BlockSpec((H, W, nc_tile), lambda i, s: (0, 0, i)),
                      pl.BlockSpec((H, W, nc_tile), lambda i, s: (0, 0, i))],
            out_specs=pl.BlockSpec((H, W, nc_tile), lambda i, s: (0, 0, i)),
        ),
        compiler_params=cparams,
    )(scalars, x_hwc, pattern, g_hwc)

    return jnp.transpose(out_hwc, (2, 0, 1)).reshape(N, C, H, W)


def disout_forward(x_nchw, *, dist_prob, block_size=3, alpha=1.0, key=None):
    """Training-mode Disout forward (fresh randomness from `key`)."""
    if key is None:
        key = jax.random.PRNGKey(0)
    N, C, H, W = x_nchw.shape
    NC = N * C
    ku, kg = jax.random.split(key)
    # TODO(synk): randomness is drawn with jax.random in the wrapper (exact
    # normal, fresh per call); in-kernel pltpu.prng_* would avoid these HBM
    # reads on hardware but has no interpret-mode lowering.
    u = jax.random.uniform(ku, (H, W, NC), dtype=jnp.float32)
    g = jax.random.normal(kg, (H, W, NC), dtype=jnp.float32)
    return _disout_apply(x_nchw, u, g, dist_prob=dist_prob,
                         block_size=block_size, alpha=alpha)


# ----------------------------------------------------------------------------
# Pure-jnp reference (mirrors the PyTorch Disout forward) for self-checking;
# shares the same uniform / normal draws as the Pallas path.
# ----------------------------------------------------------------------------
def _disout_reference(x_nchw, u_hwc, g_hwc, *, dist_prob, block_size, alpha):
    N, C, H, W = x_nchw.shape
    NC = N * C
    k = int(block_size)
    lo, ub = k // 2, (k - 1) // 2
    sdr = (float(dist_prob) * (W * H) / (k ** 2)
           / ((W - k + 1) * (H - k + 1)))
    hh = jnp.arange(H)[:, None, None]
    ww = jnp.arange(W)[None, :, None]
    valid = (hh >= lo) & (hh < H - ub) & (ww >= lo) & (ww < W - ub)
    seeds = (valid & (u_hwc < sdr)).astype(jnp.float32)          # (H, W, NC)
    dil = lax.reduce_window(seeds, -jnp.inf, lax.max,
                            (k, k, 1), (1, 1, 1),
                            padding=((lo, ub), (lo, ub), (0, 0)))
    pattern = (dil < 0.5).astype(jnp.float32)
    x_hwc = jnp.transpose(x_nchw.reshape(NC, H, W), (1, 2, 0)).astype(jnp.float32)
    percent_ones = jnp.maximum(pattern.sum() / pattern.size, 1e-6)
    var = jnp.var(x_nchw.astype(jnp.float32), ddof=1)
    dist = float(alpha) * 0.01 * jnp.sqrt(var) * g_hwc
    out = (x_hwc * pattern + dist * (1.0 - pattern)) / percent_ones
    return jnp.transpose(out, (2, 0, 1)).reshape(N, C, H, W).astype(x_nchw.dtype)


# ----------------------------------------------------------------------------
# Module mirrors.
# ----------------------------------------------------------------------------
class Disout:
    """Feature-map distortion module; forward is Pallas-backed."""

    def __init__(self, dist_prob, block_size=3, alpha=1.0, seed=0):
        self.dist_prob = dist_prob
        self.block_size = block_size
        self.alpha = alpha
        self.training = True
        self._key = jax.random.PRNGKey(seed)

    def __call__(self, x):
        if not self.training:
            return x
        self._key, sub = jax.random.split(self._key)   # fresh draws per call
        return disout_forward(x,
                              dist_prob=float(self.dist_prob),
                              block_size=int(self.block_size),
                              alpha=float(self.alpha),
                              key=sub)


class LinearScheduler:
    """Mirror of the PyTorch LinearScheduler: forward delegates to disout."""

    def __init__(self, disout, start_value, stop_value, nr_steps):
        self.disout = disout
        self.i = 0
        self.drop_values = np.linspace(start=start_value, stop=stop_value,
                                       num=nr_steps)

    def __call__(self, x):  # == forward
        return self.disout(x)

    def step(self):
        if self.i < len(self.drop_values):
            self.disout.dist_prob = self.drop_values[self.i]
        self.i += 1


if __name__ == "__main__":
    root = jax.random.PRNGKey(0)
    kx, ku, kg = jax.random.split(root, 3)
    x = jax.random.normal(kx, (2, 4, 16, 16), dtype=jnp.float32)   # NCHW

    # Module path: LinearScheduler.forward -> disout(x)
    disout = Disout(dist_prob=0.0, block_size=3, alpha=1.0, seed=0)
    sched = LinearScheduler(disout, start_value=0.1, stop_value=0.5, nr_steps=10)
    sched.step()                       # sets disout.dist_prob = drop_values[0]
    y = sched(x)
    jax.block_until_ready(y)
    assert y.shape == x.shape and y.dtype == x.dtype
    assert bool(jnp.all(jnp.isfinite(y)))

    # Correctness check vs. a plain-jnp reference sharing the same randomness.
    N, C, H, W = x.shape
    u = jax.random.uniform(ku, (H, W, N * C), dtype=jnp.float32)
    g = jax.random.normal(kg, (H, W, N * C), dtype=jnp.float32)
    y_kernel = _disout_apply(x, u, g, dist_prob=0.1, block_size=3, alpha=1.0)
    y_ref = _disout_reference(x, u, g, dist_prob=0.1, block_size=3, alpha=1.0)
    jax.block_until_ready(y_kernel)
    assert bool(jnp.allclose(y_kernel, y_ref, rtol=1e-5, atol=1e-5)), \
        float(jnp.max(jnp.abs(y_kernel - y_ref)))

    print("KERNEL_OK")
</pallas_src>

<mosaic_0001>
module attributes {stable_mosaic.version = 11 : i64} {
  func.func @_pattern_kernel(%arg0: i32, %arg1: memref<16x16x8xf32, #tpu.memory_space<vmem>>, %arg2: memref<16x16x8xf32, #tpu.memory_space<vmem>>) attributes {dimension_semantics = [#tpu.dimension_semantics<parallel>], iteration_bounds = array<i64: 1>, scalar_prefetch = 0 : i64, scratch_operands = 0 : i64, tpu.core_type = #tpu.core_type<tc>, window_params = [{transform_indices = @transform_0, window_bounds = array<i64: 16, 16, 8>}, {transform_indices = @transform_1, window_bounds = array<i64: 16, 16, 8>}]} {
    %0 = tpu.iota {dimensions = array<i32: 0>} : vector<16x16x1xi32>
    %1 = tpu.iota {dimensions = array<i32: 1>} : vector<16x16x1xi32>
    %c1_i32 = arith.constant 1 : i32
    %2 = vector.broadcast %c1_i32 : i32 to vector<16x16x1xi32>
    %3 = arith.cmpi sge, %0, %2 : vector<16x16x1xi32>
    %c15_i32 = arith.constant 15 : i32
    %4 = vector.broadcast %c15_i32 : i32 to vector<16x16x1xi32>
    %5 = arith.cmpi slt, %0, %4 : vector<16x16x1xi32>
    %6 = arith.andi %3, %5 : vector<16x16x1xi1>
    %c1_i32_0 = arith.constant 1 : i32
    %7 = vector.broadcast %c1_i32_0 : i32 to vector<16x16x1xi32>
    %8 = arith.cmpi sge, %1, %7 : vector<16x16x1xi32>
    %9 = arith.andi %6, %8 : vector<16x16x1xi1>
    %c15_i32_1 = arith.constant 15 : i32
    %10 = vector.broadcast %c15_i32_1 : i32 to vector<16x16x1xi32>
    %11 = arith.cmpi slt, %1, %10 : vector<16x16x1xi32>
    %12 = arith.andi %9, %11 : vector<16x16x1xi1>
    %c0 = arith.constant 0 : index
    %c0_2 = arith.constant 0 : index
    %c0_3 = arith.constant 0 : index
    %13 = vector.load %arg1[%c0, %c0_2, %c0_3] : memref<16x16x8xf32, #tpu.memory_space<vmem>>, vector<16x16x8xf32>
    %cst = arith.constant 0.0145124719 : f32
    %14 = vector.broadcast %cst : f32 to vector<16x16x8xf32>
    %15 = arith.cmpf olt, %13, %14 : vector<16x16x8xf32>
    %16 = vector.broadcast %12 : vector<16x16x1xi1> to vector<16x16x8xi1>
    %17 = arith.andi %16, %15 : vector<16x16x8xi1>
    %cst_4 = arith.constant 1.000000e+00 : f32
    %cst_5 = arith.constant 0.000000e+00 : f32
    %18 = vector.broadcast %cst_4 : f32 to vector<16x16x8xf32>
    %19 = vector.broadcast %cst_5 : f32 to vector<16x16x8xf32>
    %20 = arith.select %17, %18, %19 : vector<16x16x8xi1>, vector<16x16x8xf32>
    %cst_6 = arith.constant 0.000000e+00 : f32
    %21 = vector.broadcast %cst_6 : f32 to vector<16x1x8xf32>
    %cst_7 = arith.constant 0.000000e+00 : f32
    %22 = vector.broadcast %cst_7 : f32 to vector<16x1x8xf32>
    %23 = tpu.concatenate %21, %20, %22 in 1 : vector<16x1x8xf32>, vector<16x16x8xf32>, vector<16x1x8xf32> -> vector<16x18x8xf32>
    %24 = vector.extract_strided_slice %23 {offsets = [0, 0, 0], sizes = [16, 16, 8], strides = [1, 1, 1]} : vector<16x18x8xf32> to vector<16x16x8xf32>
    %25 = vector.extract_strided_slice %23 {offsets = [0, 1, 0], sizes = [16, 16, 8], strides = [1, 1, 1]} : vector<16x18x8xf32> to vector<16x16x8xf32>
    %26 = arith.addf %24, %25 : vector<16x16x8xf32>
    %27 = vector.extract_strided_slice %23 {offsets = [0, 2, 0], sizes = [16, 16, 8], strides = [1, 1, 1]} : vector<16x18x8xf32> to vector<16x16x8xf32>
    %28 = arith.addf %26, %27 : vector<16x16x8xf32>
    %cst_8 = arith.constant 0.000000e+00 : f32
    %29 = vector.broadcast %cst_8 : f32 to vector<1x16x8xf32>
    %cst_9 = arith.constant 0.000000e+00 : f32
    %30 = vector.broadcast %cst_9 : f32 to vector<1x16x8xf32>
    %31 = tpu.concatenate %29, %28, %30 in 0 : vector<1x16x8xf32>, vector<16x16x8xf32>, vector<1x16x8xf32> -> vector<18x16x8xf32>
    %32 = vector.extract_strided_slice %31 {offsets = [0, 0, 0], sizes = [16, 16, 8], strides = [1, 1, 1]} : vector<18x16x8xf32> to vector<16x16x8xf32>
    %33 = vector.extract_strided_slice %31 {offsets = [1, 0, 0], sizes = [16, 16, 8], strides = [1, 1, 1]} : vector<18x16x8xf32> to vector<16x16x8xf32>
    %34 = arith.addf %32, %33 : vector<16x16x8xf32>
    %35 = vector.extract_strided_slice %31 {offsets = [2, 0, 0], sizes = [16, 16, 8], strides = [1, 1, 1]} : vector<18x16x8xf32> to vector<16x16x8xf32>
    %36 = arith.addf %34, %35 : vector<16x16x8xf32>
    %cst_10 = arith.constant 5.000000e-01 : f32
    %37 = vector.broadcast %cst_10 : f32 to vector<16x16x8xf32>
    %38 = arith.cmpf olt, %36, %37 : vector<16x16x8xf32>
    %39 = arith.extui %38 : vector<16x16x8xi1> to vector<16x16x8xi32>
    %40 = arith.sitofp %39 : vector<16x16x8xi32> to vector<16x16x8xf32>
    %c0_11 = arith.constant 0 : index
    %c0_12 = arith.constant 0 : index
    %c0_13 = arith.constant 0 : index
    %41 = vector.load %arg2[%c0_11, %c0_12, %c0_13] : memref<16x16x8xf32, #tpu.memory_space<vmem>>, vector<16x16x8xf32>
    tpu.vector_store %arg2[%c0_11, %c0_12, %c0_13], %40 {strides = array<i32>} : memref<16x16x8xf32, #tpu.memory_space<vmem>>, vector<16x16x8xf32>,
    return
  }
  func.func @transform_0(%arg0: i32) -> (i32, i32, i32) {
    %c0_i32 = arith.constant 0 : i32
    %c0_i32_0 = arith.constant 0 : i32
    %c0_i32_1 = arith.constant 0 : i32
    return %c0_i32, %c0_i32_0, %arg0 : i32, i32, i32
  }
  func.func @transform_1(%arg0: i32) -> (i32, i32, i32) {
    %c0_i32 = arith.constant 0 : i32
    %c0_i32_0 = arith.constant 0 : i32
    %c0_i32_1 = arith.constant 0 : i32
    return %c0_i32, %c0_i32_0, %arg0 : i32, i32, i32
  }
}

</mosaic_0001>

<bundles_post_ra>
// kernel: tpu_custom_call.1
= control target key start
LH: loop header
LB: loop body
LE: loop exit
PB: predicated region body
PF: predicated region fallthrough
CT: control target
= control target key end

     0   :  { %v8_v0 = vlaneseq  ;;  %vm191_vm0 = vcmask 1040384   ;;  %v872_v3 = vmov 0.0   ;;  %vm352_vm1 = vcmask 1046528   ;;  %s1383_s0 = inlined_call_operand.vmem [shape: f32[16,16,8], index: 0, kind: input, shape index: {}]   ;;  %s1384_s1 = inlined_call_operand.vmem [shape: f32[16,16,8], index: 1, kind: output, shape index: {}]  }
   0x1   :  { %v25_v1 = vld [vmem:[%s1383_s0 + $0x10] sm:$0xff]  ;;  %v26_v2 = vld [vmem:[%s1383_s0 + $0x18] sm:$0xff]  ;;  %v192_v4 = vrot.slane %v872_v3, 7  ;;  %vm497_vm2 = vcmask 1045504   ;;  %v27_v5 = vld [vmem:[%s1383_s0 + $0x20] sm:$0xff] }
   0x2   :  { %v893_v6 = vshrl.u32 %v8_v0, 7  ;;  %vm57_vm3 = vcmp.lt.f32.partialorder %v25_v1, 0.014512472  ;;  %vm58_vm4 = vcmp.lt.f32.partialorder %v26_v2, 0.014512472  ;;  %v28_v7 = vld [vmem:[%s1383_s0 + $0x28] sm:$0xff] }
   0x3   :  { %v288_v8 = vsel %vm191_vm0, 0.0, %v192_v4  ;;  %v354_v9 = vrot.slane %v192_v4, 1  ;;  %v499_v10 = vrot.slane %v192_v4, 2  ;;  %v304_v11 = vsel %vm191_vm0, %v192_v4, 0.0  ;;  %v29_v15 = vld [vmem:[%s1383_s0 + $0x30] sm:$0xff]  ;;  %v30_v28 = vld [vmem:[%s1383_s0 + $0x38] sm:$0xff] }
   0x4   :  { %v901_v12 = vadd.s32 8, %v893_v6  ;;  %vm11_vm5 = vcmp.ge.s32.totalorder %v893_v6, 1  ;;  %v353_v13 = vrot.slane %v288_v8, 1  ;;  %v498_v14 = vrot.slane %v288_v8, 2  ;;  %v31_v0 = vld [vmem:[%s1383_s0 + $0x40] sm:$0xff]  ;;  %v32_v1 = vld [vmem:[%s1383_s0 + $0x48] sm:$0xff] }
   0x5   :  { %vm97_vm6 = vmand %vm11_vm5, %vm57_vm3  ;;  %v356_v16 = vrot.slane %v304_v11, 1  ;;  %v501_v17 = vrot.slane %v304_v11, 2  ;;  %vm59_vm7 = vcmp.lt.f32.partialorder %v27_v5, 0.014512472  ;;  %vm60_vm8 = vcmp.lt.f32.partialorder %v28_v7, 0.014512472 }
   0x6   :  { %vm18_vm9 = vcmp.lt.s32.totalorder %v901_v12, 15  ;;  %v129_v18 = vsel %vm97_vm6, 1.0, %v872_v3  ;;  %v355_v19 = vsel %vm352_vm1, %v353_v13, %v354_v9  ;;  %v500_v20 = vsel %vm497_vm2, %v498_v14, %v499_v10  ;;  %vm99_vm10 = vmand %vm11_vm5, %vm59_vm7 }
   0x7   :  { %vm98_vm11 = vmand %vm18_vm9, %vm58_vm4  ;;  %v195_v21 = vrot.slane %v129_v18, 7  ;;  %v465_v22 = vadd.f32 %v355_v19, %v288_v8  ;;  %v357_v23 = vsel %vm352_vm1, %v354_v9, %v356_v16  ;;  %v502_v24 = vsel %vm497_vm2, %v499_v10, %v501_v17 }
   0x8   :  { %v130_v25 = vsel %vm98_vm11, 1.0, %v872_v3  ;;  %v466_v26 = vadd.f32 %v357_v23, %v192_v4  ;;  %vm100_vm12 = vmand %vm18_vm9, %vm60_vm8  ;;  %v131_v27 = vsel %vm99_vm10, 1.0, %v872_v3  ;;  %vm61_vm13 = vcmp.lt.f32.partialorder %v29_v15, 0.014512472 }
   0x9   :  { %v196_v29 = vrot.slane %v130_v25, 7  ;;  %v289_v30 = vsel %vm191_vm0, 0.0, %v195_v21  ;;  %v928_v31 = vadd.f32 %v500_v20, %v465_v22  ;;  %v132_v32 = vsel %vm100_vm12, 1.0, %v872_v3  ;;  %vm101_vm14 = vmand %vm11_vm5, %vm61_vm13 }
   0xa   :  { %v358_v33 = vrot.slane %v289_v30, 1  ;;  %v503_v34 = vrot.slane %v289_v30, 2  ;;  %v931_v35 = vadd.f32 %v502_v24, %v466_v26  ;;  %v198_v36 = vrot.slane %v131_v27, 7 }
   0xb   :  { %v197_v37 = vsel %vm191_vm0, %v195_v21, %v196_v29  ;;  %v305_v38 = vsel %vm191_vm0, %v196_v29, 0.0  ;;  %v199_v39 = vrot.slane %v132_v32, 7  ;;  %vm62_vm15 = vcmp.lt.f32.partialorder %v30_v28, 0.014512472 }
   0xc   :  { %v359_v40 = vrot.slane %v197_v37, 1  ;;  %v504_v41 = vrot.slane %v197_v37, 2  ;;  %vm802_vm3 = vcmask 64512   ;;  %v361_v42 = vrot.slane %v305_v38, 1  ;;  %vm102_vm4 = vmand %vm18_vm9, %vm62_vm15 }
   0xd   :  { %v506_v43 = vrot.slane %v305_v38, 2  ;;  %v200_v44 = vsel %vm191_vm0, %v198_v36, %v199_v39  ;;  %v290_v45 = vsel %vm191_vm0, 0.0, %v198_v36  ;;  %v306_v46 = vsel %vm191_vm0, %v199_v39, 0.0  ;;  %v33_v39 = vld [vmem:[%s1383_s0 + $0x50] sm:$0xff] }
   0xe   :  { %v133_v47 = vsel %vm101_vm14, 1.0, %v872_v3  ;;  %v360_v48 = vsel %vm352_vm1, %v358_v33, %v359_v40  ;;  %v505_v49 = vsel %vm497_vm2, %v503_v34, %v504_v41  ;;  %v362_v50 = vsel %vm352_vm1, %v359_v40, %v361_v42  ;;  %v34_v40 = vld [vmem:[%s1383_s0 + $0x58] sm:$0xff] }
   0xf   :  { %v507_v51 = vsel %vm497_vm2, %v504_v41, %v506_v43  ;;  %v467_v52 = vadd.f32 %v360_v48, %v289_v30  ;;  %v468_v53 = vadd.f32 %v362_v50, %v197_v37  ;;  %v363_v54 = vrot.slane %v290_v45, 1 }
  0x10   :  { %v364_v55 = vrot.slane %v200_v44, 1  ;;  %v508_v56 = vrot.slane %v290_v45, 2  ;;  %v509_v57 = vrot.slane %v200_v44, 2  ;;  %v366_v58 = vrot.slane %v306_v46, 1 }
  0x11   :  { %v511_v59 = vrot.slane %v306_v46, 2  ;;  %v612_v60 = vadd.f32 %v505_v49, %v467_v52  ;;  %v613_v61 = vadd.f32 %v507_v51, %v468_v53  ;;  %v134_v63 = vsel %vm102_vm4, 1.0, %v872_v3 }
  0x12   :  { %v365_v62 = vsel %vm352_vm1, %v363_v54, %v364_v55  ;;  %v510_v4 = vsel %vm497_vm2, %v508_v56, %v509_v57  ;;  %v367_v5 = vsel %vm352_vm1, %v364_v55, %v366_v58  ;;  %v201_v11 = vrot.slane %v133_v47, 7 }
  0x13   :  { %v469_v2 = vadd.f32 %v365_v62, %v290_v45  ;;  %v512_v7 = vsel %vm497_vm2, %v509_v57, %v511_v59  ;;  %v644_v8 = vadd.f32 %v612_v60, %v928_v31  ;;  %v645_v9 = vadd.f32 %v613_v61, %v931_v35 }
  0x14   :  { %v470_v10 = vadd.f32 %v367_v5, %v200_v44  ;;  %v202_v14 = vrot.slane %v134_v63, 7  ;;  %vm63_vm6 = vcmp.lt.f32.partialorder %v31_v0, 0.014512472  ;;  %vm64_vm7 = vcmp.lt.f32.partialorder %v32_v1, 0.014512472 }
  0x15   :  { %v614_v13 = vadd.f32 %v510_v4, %v469_v2  ;;  %vm706_vm8 = vcmp.lt.f32.partialorder %v644_v8, 0.5  ;;  %vm707_vm10 = vcmp.lt.f32.partialorder %v645_v9, 0.5  ;;  %v291_v16 = vsel %vm191_vm0, 0.0, %v201_v11  ;;  %vm975_vm11 = vmand %vm11_vm5, %vm63_vm6  ;;  %v35_v2 = vld [vmem:[%s1383_s0 + $0x60] sm:$0xff] }
  0x16   :  { %v615_v15 = vadd.f32 %v512_v7, %v470_v10  ;;  %v839_v17 = vsel %vm706_vm8, 1.0, %v872_v3  ;;  %v840_v18 = vsel %vm707_vm10, 1.0, %v872_v3  ;;  %v203_v20 = vsel %vm191_vm0, %v201_v11, %v202_v14  ;;  %vm983_vm13 = vmand %vm18_vm9, %vm64_vm7 }
  0x17   :  { %v676_v19 = vadd.f32 %v644_v8, %v614_v13  ;;  %803 = vst.msk [vmem:[%s1384_s1] sm:$0xff] %vm802_vm3, %v839_v17  ;;  %804 = vst.msk [vmem:[%s1384_s1 + $0x8] sm:$0xff] %vm802_vm3, %v840_v18  ;;  %v368_v22 = vrot.slane %v291_v16, 1  ;;  %v369_v23 = vrot.slane %v203_v20, 1  ;;  %v513_v24 = vrot.slane %v291_v16, 2  ;;  %v36_v8 = vld [vmem:[%s1383_s0 + $0x68] sm:$0xff] }
  0x18   :  { %v677_v21 = vadd.f32 %v645_v9, %v615_v15  ;;  %v514_v26 = vrot.slane %v203_v20, 2  ;;  %v646_v27 = vadd.f32 %v614_v13, %v612_v60  ;;  %v307_v28 = vsel %vm191_vm0, %v202_v14, 0.0  ;;  %v37_v9 = vld [vmem:[%s1383_s0 + $0x70] sm:$0xff] }
  0x19   :  { %vm708_vm12 = vcmp.lt.f32.partialorder %v676_v19, 0.5  ;;  %v370_v32 = vsel %vm352_vm1, %v368_v22, %v369_v23  ;;  %v371_v33 = vrot.slane %v307_v28, 1  ;;  %v516_v38 = vrot.slane %v307_v28, 2 }
  0x1a   :  { %v841_v30 = vsel %vm708_vm12, 1.0, %v872_v3  ;;  %vm709_vm14 = vcmp.lt.f32.partialorder %v677_v21, 0.5  ;;  %v471_v36 = vadd.f32 %v370_v32, %v291_v16  ;;  %v515_v37 = vsel %vm497_vm2, %v513_v24, %v514_v26 }
  0x1b   :  { %805 = vst.msk [vmem:[%s1384_s1 + $0x10] sm:$0xff] %vm802_vm3, %v841_v30  ;;  %v842_v34 = vsel %vm709_vm14, 1.0, %v872_v3  ;;  %v372_v41 = vsel %vm352_vm1, %v369_v23, %v371_v33  ;;  %v647_v42 = vadd.f32 %v615_v15, %v613_v61  ;;  %v135_v43 = vsel %vm975_vm11, 1.0, %v872_v3 }
  0x1c   :  { %806 = vst.msk [vmem:[%s1384_s1 + $0x18] sm:$0xff] %vm802_vm3, %v842_v34  ;;  %v136_v44 = vsel %vm983_vm13, 1.0, %v872_v3  ;;  %v616_v45 = vadd.f32 %v515_v37, %v471_v36  ;;  %v472_v46 = vadd.f32 %v372_v41, %v203_v20  ;;  %v517_v47 = vsel %vm497_vm2, %v514_v26, %v516_v38 }
  0x1d   :  { %v204_v48 = vrot.slane %v135_v43, 7  ;;  %v205_v49 = vrot.slane %v136_v44, 7  ;;  %vm65_vm15 = vcmp.lt.f32.partialorder %v33_v39, 0.014512472  ;;  %vm66_vm4 = vcmp.lt.f32.partialorder %v34_v40, 0.014512472 }
  0x1e   :  { %v678_v50 = vadd.f32 %v646_v27, %v616_v45  ;;  %v617_v51 = vadd.f32 %v517_v47, %v472_v46  ;;  %v648_v53 = vadd.f32 %v616_v45, %v614_v13  ;;  %vm105_vm6 = vmand %vm11_vm5, %vm65_vm15  ;;  %vm67_vm11 = vcmp.lt.f32.partialorder %v35_v2, 0.014512472 }
  0x1f   :  { %v292_v52 = vsel %vm191_vm0, 0.0, %v204_v48  ;;  %v206_v54 = vsel %vm191_vm0, %v204_v48, %v205_v49  ;;  %v308_v57 = vsel %vm191_vm0, %v205_v49, 0.0  ;;  %vm1022_vm8 = vmand %vm18_vm9, %vm66_vm4  ;;  %v137_v7 = vsel %vm105_vm6, 1.0, %v872_v3 }
  0x20   :  { %v373_v55 = vrot.slane %v292_v52, 1  ;;  %v518_v56 = vrot.slane %v292_v52, 2  ;;  %vm710_vm7 = vcmp.lt.f32.partialorder %v678_v50, 0.5  ;;  %v679_v58 = vadd.f32 %v647_v42, %v617_v51  ;;  %vm107_vm13 = vmand %vm11_vm5, %vm67_vm11 }
  0x21   :  { %v374_v59 = vrot.slane %v206_v54, 1  ;;  %v519_v60 = vrot.slane %v206_v54, 2  ;;  %v843_v61 = vsel %vm710_vm7, 1.0, %v872_v3  ;;  %v376_v62 = vrot.slane %v308_v57, 1 }
  0x22   :  { %v521_v63 = vrot.slane %v308_v57, 2  ;;  %v649_v0 = vadd.f32 %v617_v51, %v615_v15  ;;  %807 = vst.msk [vmem:[%s1384_s1 + $0x20] sm:$0xff] %vm802_vm3, %v843_v61  ;;  %vm711_vm10 = vcmp.lt.f32.partialorder %v679_v58, 0.5  ;;  %v38_v15 = vld [vmem:[%s1383_s0 + $0x78] sm:$0xff]  ;;  %v138_v17 = vsel %vm1022_vm8, 1.0, %v872_v3 }
  0x23   :  { %v375_v4 = vsel %vm352_vm1, %v373_v55, %v374_v59  ;;  %v520_v5 = vsel %vm497_vm2, %v518_v56, %v519_v60  ;;  %v844_v10 = vsel %vm711_vm10, 1.0, %v872_v3  ;;  %v377_v13 = vsel %vm352_vm1, %v374_v59, %v376_v62 }
  0x24   :  { %v473_v11 = vadd.f32 %v375_v4, %v292_v52  ;;  %v522_v14 = vsel %vm497_vm2, %v519_v60, %v521_v63  ;;  %808 = vst.msk [vmem:[%s1384_s1 + $0x28] sm:$0xff] %vm802_vm3, %v844_v10  ;;  %v474_v16 = vadd.f32 %v377_v13, %v206_v54  ;;  %v207_v18 = vrot.slane %v137_v7, 7 }
  0x25   :  { %v208_v20 = vrot.slane %v138_v17, 7  ;;  %vm68_vm12 = vcmp.lt.f32.partialorder %v36_v8, 0.014512472  ;;  %vm69_vm14 = vcmp.lt.f32.partialorder %v37_v9, 0.014512472  ;;  %v139_v23 = vsel %vm107_vm13, 1.0, %v872_v3 }
  0x26   :  { %v618_v19 = vadd.f32 %v520_v5, %v473_v11  ;;  %v619_v21 = vadd.f32 %v522_v14, %v474_v16  ;;  %v293_v22 = vsel %vm191_vm0, 0.0, %v207_v18  ;;  %vm108_vm15 = vmand %vm18_vm9, %vm68_vm12  ;;  %vm70_vm4 = vcmp.lt.f32.partialorder %v38_v15, 0.014512472 }
  0x27   :  { %v209_v25 = vsel %vm191_vm0, %v207_v18, %v208_v20  ;;  %v378_v26 = vrot.slane %v293_v22, 1  ;;  %v523_v27 = vrot.slane %v293_v22, 2  ;;  %vm1064_vm6 = vmand %vm11_vm5, %vm69_vm14  ;;  %v309_v34 = vsel %vm191_vm0, %v208_v20, 0.0  ;;  %v39_v18 = vld [vmem:[%s1383_s0 + $0x80] sm:$0xff] }
  0x28   :  { %v680_v24 = vadd.f32 %v648_v53, %v618_v19  ;;  %v681_v28 = vadd.f32 %v649_v0, %v619_v21  ;;  %v379_v29 = vrot.slane %v209_v25, 1  ;;  %v524_v30 = vrot.slane %v209_v25, 2  ;;  %vm110_vm8 = vmand %vm18_vm9, %vm70_vm4 }
  0x29   :  { %v650_v32 = vadd.f32 %v618_v19, %v616_v45  ;;  %v651_v36 = vadd.f32 %v619_v21, %v617_v51  ;;  %v140_v37 = vsel %vm108_vm15, 1.0, %v872_v3  ;;  %v381_v43 = vrot.slane %v309_v34, 1 }
  0x2a   :  { %vm712_vm7 = vcmp.lt.f32.partialorder %v680_v24, 0.5  ;;  %vm713_vm10 = vcmp.lt.f32.partialorder %v681_v28, 0.5  ;;  %v380_v39 = vsel %vm352_vm1, %v378_v26, %v379_v29  ;;  %v525_v40 = vsel %vm497_vm2, %v523_v27, %v524_v30 }
  0x2b   :  { %v845_v38 = vsel %vm712_vm7, 1.0, %v872_v3  ;;  %v846_v41 = vsel %vm713_vm10, 1.0, %v872_v3  ;;  %v475_v42 = vadd.f32 %v380_v39, %v293_v22  ;;  %v526_v44 = vrot.slane %v309_v34, 2 }
  0x2c   :  { %809 = vst.msk [vmem:[%s1384_s1 + $0x30] sm:$0xff] %vm802_vm3, %v845_v38  ;;  %810 = vst.msk [vmem:[%s1384_s1 + $0x38] sm:$0xff] %vm802_vm3, %v846_v41  ;;  %v210_v45 = vrot.slane %v139_v23, 7  ;;  %v211_v46 = vrot.slane %v140_v37, 7  ;;  %v141_v47 = vsel %vm1064_vm6, 1.0, %v872_v3  ;;  %v142_v48 = vsel %vm110_vm8, 1.0, %v872_v3 }
  0x2d   :  { %v620_v49 = vadd.f32 %v525_v40, %v475_v42  ;;  %v382_v50 = vsel %vm352_vm1, %v379_v29, %v381_v43  ;;  %v527_v51 = vsel %vm497_vm2, %v524_v30, %v526_v44  ;;  %v213_v52 = vrot.slane %v141_v47, 7  ;;  %v41_v41 = vld [vmem:[%s1383_s0 + $0x90] sm:$0xff]  ;;  %v42_v42 = vld [vmem:[%s1383_s0 + $0x98] sm:$0xff] }
  0x2e   :  { %v476_v53 = vadd.f32 %v382_v50, %v209_v25  ;;  %v212_v54 = vsel %vm191_vm0, %v210_v45, %v211_v46  ;;  %v294_v55 = vsel %vm191_vm0, 0.0, %v210_v45  ;;  %v310_v56 = vsel %vm191_vm0, %v211_v46, 0.0 }
  0x2f   :  { %v682_v57 = vadd.f32 %v650_v32, %v620_v49  ;;  %v383_v58 = vrot.slane %v294_v55, 1  ;;  %v384_v59 = vrot.slane %v212_v54, 1  ;;  %v528_v60 = vrot.slane %v294_v55, 2 }
  0x30   :  { %v621_v61 = vadd.f32 %v527_v51, %v476_v53  ;;  %v529_v62 = vrot.slane %v212_v54, 2  ;;  %v652_v63 = vadd.f32 %v620_v49, %v618_v19  ;;  %v386_v0 = vrot.slane %v310_v56, 1  ;;  %v40_v19 = vld [vmem:[%s1383_s0 + $0x88] sm:$0xff] }
  0x31   :  { %vm714_vm11 = vcmp.lt.f32.partialorder %v682_v57, 0.5  ;;  %v385_v1 = vsel %vm352_vm1, %v383_v58, %v384_v59  ;;  %v531_v2 = vrot.slane %v310_v56, 2  ;;  %v214_v4 = vrot.slane %v142_v48, 7 }
  0x32   :  { %v847_v5 = vsel %vm714_vm11, 1.0, %v872_v3  ;;  %v683_v7 = vadd.f32 %v651_v36, %v621_v61  ;;  %v477_v8 = vadd.f32 %v385_v1, %v294_v55  ;;  %v530_v9 = vsel %vm497_vm2, %v528_v60, %v529_v62 }
  0x33   :  { %811 = vst.msk [vmem:[%s1384_s1 + $0x40] sm:$0xff] %vm802_vm3, %v847_v5  ;;  %v387_v10 = vsel %vm352_vm1, %v384_v59, %v386_v0  ;;  %v532_v11 = vsel %vm497_vm2, %v529_v62, %v531_v2  ;;  %v653_v13 = vadd.f32 %v621_v61, %v619_v21  ;;  %v215_v14 = vsel %vm191_vm0, %v213_v52, %v214_v4  ;;  %v43_v5 = vld [vmem:[%s1383_s0 + $0xa0] sm:$0xff] }
  0x34   :  { %vm715_vm12 = vcmp.lt.f32.partialorder %v683_v7, 0.5  ;;  %v622_v15 = vadd.f32 %v530_v9, %v477_v8  ;;  %v478_v16 = vadd.f32 %v387_v10, %v212_v54  ;;  %v295_v17 = vsel %vm191_vm0, 0.0, %v213_v52 }
  0x35   :  { %v848_v20 = vsel %vm715_vm12, 1.0, %v872_v3  ;;  %v388_v22 = vrot.slane %v295_v17, 1  ;;  %v389_v23 = vrot.slane %v215_v14, 1  ;;  %v533_v21 = vrot.slane %v295_v17, 2 }
  0x36   :  { %812 = vst.msk [vmem:[%s1384_s1 + $0x48] sm:$0xff] %vm802_vm3, %v848_v20  ;;  %v684_v24 = vadd.f32 %v652_v63, %v622_v15  ;;  %v623_v25 = vadd.f32 %v532_v11, %v478_v16  ;;  %v534_v26 = vrot.slane %v215_v14, 2  ;;  %v654_v27 = vadd.f32 %v622_v15, %v620_v49 }
  0x37   :  { %v390_v28 = vsel %vm352_vm1, %v388_v22, %v389_v23  ;;  %v311_v29 = vsel %vm191_vm0, %v214_v4, 0.0  ;;  %vm71_vm13 = vcmp.lt.f32.partialorder %v39_v18, 0.014512472  ;;  %vm72_vm14 = vcmp.lt.f32.partialorder %v40_v19, 0.014512472  ;;  %v44_v18 = vld [vmem:[%s1383_s0 + $0xa8] sm:$0xff] }
  0x38   :  { %vm716_vm15 = vcmp.lt.f32.partialorder %v684_v24, 0.5  ;;  %v685_v30 = vadd.f32 %v653_v13, %v623_v25  ;;  %v479_v32 = vadd.f32 %v390_v28, %v295_v17  ;;  %v535_v33 = vsel %vm497_vm2, %v533_v21, %v534_v26  ;;  %vm111_vm4 = vmand %vm11_vm5, %vm71_vm13 }
  0x39   :  { %v849_v34 = vsel %vm716_vm15, 1.0, %v872_v3  ;;  %v391_v36 = vrot.slane %v311_v29, 1  ;;  %v536_v37 = vrot.slane %v311_v29, 2  ;;  %vm112_vm6 = vmand %vm18_vm9, %vm72_vm14  ;;  %v143_v39 = vsel %vm111_vm4, 1.0, %v872_v3 }
  0x3a   :  { %813 = vst.msk [vmem:[%s1384_s1 + $0x50] sm:$0xff] %vm802_vm3, %v849_v34  ;;  %vm717_vm7 = vcmp.lt.f32.partialorder %v685_v30, 0.5  ;;  %v624_v38 = vadd.f32 %v535_v33, %v479_v32  ;;  %v144_v40 = vsel %vm112_vm6, 1.0, %v872_v3  ;;  %v216_v46 = vrot.slane %v143_v39, 7 }
  0x3b   :  { %v850_v43 = vsel %vm717_vm7, 1.0, %v872_v3  ;;  %v392_v44 = vsel %vm352_vm1, %v389_v23, %v391_v36  ;;  %v537_v45 = vsel %vm497_vm2, %v534_v26, %v536_v37  ;;  %v655_v49 = vadd.f32 %v623_v25, %v621_v61 }
  0x3c   :  { %814 = vst.msk [vmem:[%s1384_s1 + $0x58] sm:$0xff] %vm802_vm3, %v850_v43  ;;  %v686_v47 = vadd.f32 %v654_v27, %v624_v38  ;;  %v480_v48 = vadd.f32 %v392_v44, %v215_v14  ;;  %v217_v50 = vrot.slane %v144_v40, 7  ;;  %v296_v51 = vsel %vm191_vm0, 0.0, %v216_v46  ;;  %v45_v40 = vld [vmem:[%s1383_s0 + $0xb0] sm:$0xff] }
  0x3d   :  { %v656_v52 = vadd.f32 %v624_v38, %v622_v15  ;;  %vm73_vm8 = vcmp.lt.f32.partialorder %v41_v41, 0.014512472  ;;  %vm74_vm10 = vcmp.lt.f32.partialorder %v42_v42, 0.014512472  ;;  %v393_v55 = vrot.slane %v296_v51, 1  ;;  %v46_v41 = vld [vmem:[%s1383_s0 + $0xb8] sm:$0xff] }
  0x3e   :  { %vm718_vm11 = vcmp.lt.f32.partialorder %v686_v47, 0.5  ;;  %v625_v53 = vadd.f32 %v537_v45, %v480_v48  ;;  %v218_v54 = vsel %vm191_vm0, %v216_v46, %v217_v50  ;;  %vm113_vm12 = vmand %vm11_vm5, %vm73_vm8  ;;  %v538_v58 = vrot.slane %v296_v51, 2  ;;  %v47_v45 = vld [vmem:[%s1383_s0 + $0xc0] sm:$0xff] }
  0x3f   :  { %v851_v56 = vsel %vm718_vm11, 1.0, %v872_v3  ;;  %v394_v57 = vrot.slane %v218_v54, 1  ;;  %v539_v59 = vrot.slane %v218_v54, 2  ;;  %vm114_vm13 = vmand %vm18_vm9, %vm74_vm10  ;;  %v312_v61 = vsel %vm191_vm0, %v217_v50, 0.0 }
  0x40   :  { %815 = vst.msk [vmem:[%s1384_s1 + $0x60] sm:$0xff] %vm802_vm3, %v851_v56  ;;  %v687_v60 = vadd.f32 %v655_v49, %v625_v53  ;;  %v657_v62 = vadd.f32 %v625_v53, %v623_v25  ;;  %v145_v63 = vsel %vm113_vm12, 1.0, %v872_v3  ;;  %v396_v2 = vrot.slane %v312_v61, 1 }
  0x41   :  { %v395_v0 = vsel %vm352_vm1, %v393_v55, %v394_v57  ;;  %v540_v1 = vsel %vm497_vm2, %v538_v58, %v539_v59  ;;  %v541_v4 = vrot.slane %v312_v61, 2  ;;  %v146_v8 = vsel %vm114_vm13, 1.0, %v872_v3 }
  0x42   :  { %vm719_vm14 = vcmp.lt.f32.partialorder %v687_v60, 0.5  ;;  %v481_v7 = vadd.f32 %v395_v0, %v296_v51  ;;  %v219_v9 = vrot.slane %v145_v63, 7  ;;  %v397_v11 = vsel %vm352_vm1, %v394_v57, %v396_v2  ;;  %v48_v2 = vld [vmem:[%s1383_s0 + $0xc8] sm:$0xff] }
  0x43   :  { %v852_v10 = vsel %vm719_vm14, 1.0, %v872_v3  ;;  %v542_v13 = vsel %vm497_vm2, %v539_v59, %v541_v4  ;;  %v220_v14 = vrot.slane %v146_v8, 7  ;;  %v482_v16 = vadd.f32 %v397_v11, %v218_v54 }
  0x44   :  { %816 = vst.msk [vmem:[%s1384_s1 + $0x68] sm:$0xff] %vm802_vm3, %v852_v10  ;;  %v626_v15 = vadd.f32 %v540_v1, %v481_v7  ;;  %v297_v17 = vsel %vm191_vm0, 0.0, %v219_v9  ;;  %vm75_vm15 = vcmp.lt.f32.partialorder %v43_v5, 0.014512472  ;;  %vm76_vm4 = vcmp.lt.f32.partialorder %v44_v18, 0.014512472 }
  0x45   :  { %v221_v19 = vsel %vm191_vm0, %v219_v9, %v220_v14  ;;  %v398_v20 = vrot.slane %v297_v17, 1  ;;  %v543_v22 = vrot.slane %v297_v17, 2  ;;  %v313_v23 = vsel %vm191_vm0, %v220_v14, 0.0  ;;  %vm1176_vm6 = vmand %vm11_vm5, %vm75_vm15  ;;  %v49_v9 = vld [vmem:[%s1383_s0 + $0xd0] sm:$0xff] }
  0x46   :  { %v688_v21 = vadd.f32 %v656_v52, %v626_v15  ;;  %v627_v24 = vadd.f32 %v542_v13, %v482_v16  ;;  %v399_v25 = vrot.slane %v221_v19, 1  ;;  %v544_v26 = vrot.slane %v221_v19, 2  ;;  %vm116_vm8 = vmand %vm18_vm9, %vm76_vm4 }
  0x47   :  { %v658_v27 = vadd.f32 %v626_v15, %v624_v38  ;;  %v401_v28 = vrot.slane %v313_v23, 1  ;;  %v546_v29 = vrot.slane %v313_v23, 2  ;;  %v147_v44 = vsel %vm1176_vm6, 1.0, %v872_v3 }
  0x48   :  { %vm720_vm7 = vcmp.lt.f32.partialorder %v688_v21, 0.5  ;;  %v689_v32 = vadd.f32 %v657_v62, %v627_v24  ;;  %v400_v33 = vsel %vm352_vm1, %v398_v20, %v399_v25  ;;  %v545_v34 = vsel %vm497_vm2, %v543_v22, %v544_v26 }
  0x49   :  { %v853_v36 = vsel %vm720_vm7, 1.0, %v872_v3  ;;  %v483_v37 = vadd.f32 %v400_v33, %v297_v17  ;;  %v402_v38 = vsel %vm352_vm1, %v399_v25, %v401_v28  ;;  %v547_v39 = vsel %vm497_vm2, %v544_v26, %v546_v29 }
  0x4a   :  { %817 = vst.msk [vmem:[%s1384_s1 + $0x70] sm:$0xff] %vm802_vm3, %v853_v36  ;;  %vm721_vm10 = vcmp.lt.f32.partialorder %v689_v32, 0.5  ;;  %v484_v42 = vadd.f32 %v402_v38, %v221_v19  ;;  %v659_v43 = vadd.f32 %v627_v24, %v625_v53  ;;  %v148_v48 = vsel %vm116_vm8, 1.0, %v872_v3  ;;  %v50_v38 = vld [vmem:[%s1383_s0 + $0xd8] sm:$0xff] }
  0x4b   :  { %v854_v46 = vsel %vm721_vm10, 1.0, %v872_v3  ;;  %v628_v47 = vadd.f32 %v545_v34, %v483_v37  ;;  %v222_v49 = vrot.slane %v147_v44, 7  ;;  %v223_v51 = vrot.slane %v148_v48, 7 }
  0x4c   :  { %818 = vst.msk [vmem:[%s1384_s1 + $0x78] sm:$0xff] %vm802_vm3, %v854_v46  ;;  %v629_v50 = vadd.f32 %v547_v39, %v484_v42  ;;  %vm77_vm11 = vcmp.lt.f32.partialorder %v45_v40, 0.014512472  ;;  %vm78_vm12 = vcmp.lt.f32.partialorder %v46_v41, 0.014512472 }
  0x4d   :  { %v690_v52 = vadd.f32 %v658_v27, %v628_v47  ;;  %v298_v53 = vsel %vm191_vm0, 0.0, %v222_v49  ;;  %v660_v54 = vadd.f32 %v628_v47, %v626_v15  ;;  %vm79_vm13 = vcmp.lt.f32.partialorder %v47_v45, 0.014512472  ;;  %vm1214_vm15 = vmand %vm11_vm5, %vm77_vm11 }
  0x4e   :  { %v691_v55 = vadd.f32 %v659_v43, %v629_v50  ;;  %v224_v56 = vsel %vm191_vm0, %v222_v49, %v223_v51  ;;  %v403_v57 = vrot.slane %v298_v53, 1  ;;  %v548_v58 = vrot.slane %v298_v53, 2  ;;  %vm118_vm6 = vmand %vm18_vm9, %vm78_vm12 }
  0x4f   :  { %vm722_vm14 = vcmp.lt.f32.partialorder %v690_v52, 0.5  ;;  %v404_v59 = vrot.slane %v224_v56, 1  ;;  %v549_v60 = vrot.slane %v224_v56, 2  ;;  %v314_v61 = vsel %vm191_vm0, %v223_v51, 0.0  ;;  %vm119_vm7 = vmand %vm11_vm5, %vm79_vm13 }
  0x50   :  { %v855_v63 = vsel %vm722_vm14, 1.0, %v872_v3  ;;  %vm723_vm4 = vcmp.lt.f32.partialorder %v691_v55, 0.5  ;;  %v406_v0 = vrot.slane %v314_v61, 1  ;;  %v551_v1 = vrot.slane %v314_v61, 2 }
  0x51   :  { %819 = vst.msk [vmem:[%s1384_s1 + $0x80] sm:$0xff] %vm802_vm3, %v855_v63  ;;  %v856_v4 = vsel %vm723_vm4, 1.0, %v872_v3  ;;  %v405_v5 = vsel %vm352_vm1, %v403_v57, %v404_v59  ;;  %v550_v7 = vsel %vm497_vm2, %v548_v58, %v549_v60  ;;  %v661_v8 = vadd.f32 %v629_v50, %v627_v24 }
  0x52   :  { %820 = vst.msk [vmem:[%s1384_s1 + $0x88] sm:$0xff] %vm802_vm3, %v856_v4  ;;  %v485_v10 = vadd.f32 %v405_v5, %v298_v53  ;;  %v407_v11 = vsel %vm352_vm1, %v404_v59, %v406_v0  ;;  %v552_v13 = vsel %vm497_vm2, %v549_v60, %v551_v1  ;;  %v149_v14 = vsel %vm1214_vm15, 1.0, %v872_v3  ;;  %v51_v5 = vld [vmem:[%s1383_s0 + $0xe0] sm:$0xff] }
  0x53   :  { %v486_v15 = vadd.f32 %v407_v11, %v224_v56  ;;  %v150_v16 = vsel %vm118_vm6, 1.0, %v872_v3  ;;  %v225_v17 = vrot.slane %v149_v14, 7  ;;  %vm80_vm8 = vcmp.lt.f32.partialorder %v48_v2, 0.014512472  ;;  %v52_v11 = vld [vmem:[%s1383_s0 + $0xe8] sm:$0xff] }
  0x54   :  { %v630_v18 = vadd.f32 %v550_v7, %v485_v10  ;;  %v226_v19 = vrot.slane %v150_v16, 7  ;;  %vm120_vm10 = vmand %vm18_vm9, %vm80_vm8  ;;  %v151_v20 = vsel %vm119_vm7, 1.0, %v872_v3  ;;  %vm81_vm11 = vcmp.lt.f32.partialorder %v49_v9, 0.014512472 }
  0x55   :  { %v631_v22 = vadd.f32 %v552_v13, %v486_v15  ;;  %v299_v23 = vsel %vm191_vm0, 0.0, %v225_v17  ;;  %v152_v21 = vsel %vm120_vm10, 1.0, %v872_v3  ;;  %v228_v24 = vrot.slane %v151_v20, 7  ;;  %vm121_vm15 = vmand %vm11_vm5, %vm81_vm11 }
  0x56   :  { %v692_v25 = vadd.f32 %v660_v54, %v630_v18  ;;  %v227_v26 = vsel %vm191_vm0, %v225_v17, %v226_v19  ;;  %v408_v27 = vrot.slane %v299_v23, 1  ;;  %v553_v28 = vrot.slane %v299_v23, 2 }
  0x57   :  { %v693_v29 = vadd.f32 %v661_v8, %v631_v22  ;;  %v409_v30 = vrot.slane %v227_v26, 1  ;;  %v554_v32 = vrot.slane %v227_v26, 2  ;;  %v662_v33 = vadd.f32 %v630_v18, %v628_v47 }
  0x58   :  { %vm724_vm12 = vcmp.lt.f32.partialorder %v692_v25, 0.5  ;;  %v315_v34 = vsel %vm191_vm0, %v226_v19, 0.0  ;;  %v663_v36 = vadd.f32 %v631_v22, %v629_v50  ;;  %v229_v37 = vrot.slane %v152_v21, 7 }
  0x59   :  { %v857_v39 = vsel %vm724_vm12, 1.0, %v872_v3  ;;  %vm725_vm13 = vcmp.lt.f32.partialorder %v693_v29, 0.5  ;;  %v410_v40 = vsel %vm352_vm1, %v408_v27, %v409_v30  ;;  %v555_v41 = vsel %vm497_vm2, %v553_v28, %v554_v32 }
  0x5a   :  { %821 = vst.msk [vmem:[%s1384_s1 + $0x90] sm:$0xff] %vm802_vm3, %v857_v39  ;;  %v858_v42 = vsel %vm725_vm13, 1.0, %v872_v3  ;;  %v487_v43 = vadd.f32 %v410_v40, %v299_v23  ;;  %v411_v44 = vrot.slane %v315_v34, 1  ;;  %v556_v45 = vrot.slane %v315_v34, 2 }
  0x5b   :  { %822 = vst.msk [vmem:[%s1384_s1 + $0x98] sm:$0xff] %vm802_vm3, %v858_v42  ;;  %v230_v46 = vsel %vm191_vm0, %v228_v24, %v229_v37  ;;  %v300_v47 = vsel %vm191_vm0, 0.0, %v228_v24  ;;  %v316_v48 = vsel %vm191_vm0, %v229_v37, 0.0  ;;  %vm82_vm14 = vcmp.lt.f32.partialorder %v50_v38, 0.014512472 }
  0x5c   :  { %v632_v49 = vadd.f32 %v555_v41, %v487_v43  ;;  %v412_v50 = vsel %vm352_vm1, %v409_v30, %v411_v44  ;;  %v557_v51 = vsel %vm497_vm2, %v554_v32, %v556_v45  ;;  %v413_v52 = vrot.slane %v300_v47, 1  ;;  %vm122_vm4 = vmand %vm18_vm9, %vm82_vm14 }
  0x5d   :  { %v488_v53 = vadd.f32 %v412_v50, %v227_v26  ;;  %v414_v54 = vrot.slane %v230_v46, 1  ;;  %v558_v55 = vrot.slane %v300_v47, 2  ;;  %v559_v56 = vrot.slane %v230_v46, 2 }
  0x5e   :  { %v694_v57 = vadd.f32 %v662_v33, %v632_v49  ;;  %v664_v58 = vadd.f32 %v632_v49, %v630_v18  ;;  %v416_v59 = vrot.slane %v316_v48, 1  ;;  %v561_v60 = vrot.slane %v316_v48, 2 }
  0x5f   :  { %v633_v61 = vadd.f32 %v557_v51, %v488_v53  ;;  %v415_v62 = vsel %vm352_vm1, %v413_v52, %v414_v54  ;;  %v560_v63 = vsel %vm497_vm2, %v558_v55, %v559_v56  ;;  %v153_v0 = vsel %vm121_vm15, 1.0, %v872_v3 }
  0x60   :  { %vm726_vm6 = vcmp.lt.f32.partialorder %v694_v57, 0.5  ;;  %v489_v1 = vadd.f32 %v415_v62, %v300_v47  ;;  %v417_v2 = vsel %vm352_vm1, %v414_v54, %v416_v59  ;;  %v562_v4 = vsel %vm497_vm2, %v559_v56, %v561_v60 }
  0x61   :  { %v859_v7 = vsel %vm726_vm6, 1.0, %v872_v3  ;;  %v695_v8 = vadd.f32 %v663_v36, %v633_v61  ;;  %v490_v9 = vadd.f32 %v417_v2, %v230_v46  ;;  %v665_v10 = vadd.f32 %v633_v61, %v631_v22 }
  0x62   :  { %823 = vst.msk [vmem:[%s1384_s1 + $0xa0] sm:$0xff] %vm802_vm3, %v859_v7  ;;  %v634_v13 = vadd.f32 %v560_v63, %v489_v1  ;;  %v154_v14 = vsel %vm122_vm4, 1.0, %v872_v3  ;;  %v231_v15 = vrot.slane %v153_v0, 7  ;;  %vm83_vm8 = vcmp.lt.f32.partialorder %v51_v5, 0.014512472 }
  0x63   :  { %vm727_vm7 = vcmp.lt.f32.partialorder %v695_v8, 0.5  ;;  %v1298_v16 = vadd.f32 %v562_v4, %v490_v9  ;;  %v232_v17 = vrot.slane %v154_v14, 7  ;;  %vm84_vm10 = vcmp.lt.f32.partialorder %v52_v11, 0.014512472  ;;  %vm123_vm12 = vmand %vm11_vm5, %vm83_vm8 }
  0x64   :  { %v860_v18 = vsel %vm727_vm7, 1.0, %v872_v3  ;;  %v696_v19 = vadd.f32 %v664_v58, %v634_v13  ;;  %v301_v20 = vsel %vm191_vm0, 0.0, %v231_v15  ;;  %vm124_vm14 = vmand %vm18_vm9, %vm84_vm10  ;;  %v666_v34 = vadd.f32 %v634_v13, %v632_v49 }
  0x65   :  { %824 = vst.msk [vmem:[%s1384_s1 + $0xa8] sm:$0xff] %vm802_vm3, %v860_v18  ;;  %v697_v22 = vadd.f32 %v665_v10, %v1298_v16  ;;  %v233_v23 = vsel %vm191_vm0, %v231_v15, %v232_v17  ;;  %v418_v21 = vrot.slane %v301_v20, 1  ;;  %v563_v24 = vrot.slane %v301_v20, 2 }
  0x66   :  { %vm728_vm11 = vcmp.lt.f32.partialorder %v696_v19, 0.5  ;;  %v419_v25 = vrot.slane %v233_v23, 1  ;;  %v564_v26 = vrot.slane %v233_v23, 2  ;;  %v317_v27 = vsel %vm191_vm0, %v232_v17, 0.0 }
  0x67   :  { %v861_v28 = vsel %vm728_vm11, 1.0, %v872_v3  ;;  %vm729_vm13 = vcmp.lt.f32.partialorder %v697_v22, 0.5  ;;  %v421_v29 = vrot.slane %v317_v27, 1  ;;  %v566_v30 = vrot.slane %v317_v27, 2 }
  0x68   :  { %825 = vst.msk [vmem:[%s1384_s1 + $0xb0] sm:$0xff] %vm802_vm3, %v861_v28  ;;  %v862_v32 = vsel %vm729_vm13, 1.0, %v872_v3  ;;  %v420_v33 = vsel %vm352_vm1, %v418_v21, %v419_v25  ;;  %v565_v6 = vsel %vm497_vm2, %v563_v24, %v564_v26  ;;  %v155_v38 = vsel %vm123_vm12, 1.0, %v872_v3 }
  0x69   :  { %826 = vst.msk [vmem:[%s1384_s1 + $0xb8] sm:$0xff] %vm802_vm3, %v862_v32  ;;  %v491_v36 = vadd.f32 %v420_v33, %v301_v20  ;;  %v422_v12 = vsel %vm352_vm1, %v419_v25, %v421_v29  ;;  %v567_v37 = vsel %vm497_vm2, %v564_v26, %v566_v30  ;;  %v667_v40 = vadd.f32 %v1298_v16, %v633_v61 }
  0x6a   :  { %v492_v39 = vadd.f32 %v422_v12, %v233_v23  ;;  %v156_v41 = vsel %vm124_vm14, 1.0, %v872_v3  ;;  %v234_v42 = vrot.slane %v155_v38, 7 }
  0x6b   :  { %v636_v43 = vadd.f32 %v565_v6, %v491_v36  ;;  %v235_v44 = vrot.slane %v156_v41, 7 }
  0x6c   :  { %v637_v45 = vadd.f32 %v567_v37, %v492_v39  ;;  %v302_v46 = vsel %vm191_vm0, 0.0, %v234_v42 }
  0x6d   :  { %v698_v47 = vadd.f32 %v666_v34, %v636_v43  ;;  %v236_v48 = vsel %vm191_vm0, %v234_v42, %v235_v44  ;;  %v423_v49 = vrot.slane %v302_v46, 1  ;;  %v568_v50 = vrot.slane %v302_v46, 2 }
  0x6e   :  { %v699_v51 = vadd.f32 %v667_v40, %v637_v45  ;;  %v424_v52 = vrot.slane %v236_v48, 1  ;;  %v569_v53 = vrot.slane %v236_v48, 2  ;;  %v668_v54 = vadd.f32 %v636_v43, %v634_v13 }
  0x6f   :  { %vm730_vm5 = vcmp.lt.f32.partialorder %v698_v47, 0.5  ;;  %v318_v55 = vsel %vm191_vm0, %v235_v44, 0.0  ;;  %v669_v4 = vadd.f32 %v637_v45, %v1298_v16 }
  0x70   :  { %v863_v56 = vsel %vm730_vm5, 1.0, %v872_v3  ;;  %vm731_vm9 = vcmp.lt.f32.partialorder %v699_v51, 0.5  ;;  %v425_v57 = vsel %vm352_vm1, %v423_v49, %v424_v52  ;;  %v570_v58 = vsel %vm497_vm2, %v568_v50, %v569_v53 }
  0x71   :  { %827 = vst.msk [vmem:[%s1384_s1 + $0xc0] sm:$0xff] %vm802_vm3, %v863_v56  ;;  %v864_v59 = vsel %vm731_vm9, 1.0, %v872_v3  ;;  %v493_v60 = vadd.f32 %v425_v57, %v302_v46  ;;  %v426_v61 = vrot.slane %v318_v55, 1  ;;  %v571_v62 = vrot.slane %v318_v55, 2 }
  0x72   :  { %828 = vst.msk [vmem:[%s1384_s1 + $0xc8] sm:$0xff] %vm802_vm3, %v864_v59 }
  0x73   :  { %v638_v63 = vadd.f32 %v570_v58, %v493_v60  ;;  %v427_v0 = vsel %vm352_vm1, %v424_v52, %v426_v61  ;;  %v572_v1 = vsel %vm497_vm2, %v569_v53, %v571_v62 }
  0x74   :  { %v494_v2 = vadd.f32 %v427_v0, %v236_v48 }
  0x75   :  { %v700_v5 = vadd.f32 %v668_v54, %v638_v63  ;;  %v670_v7 = vadd.f32 %v638_v63, %v636_v43  ;;  %v672_v8 = vadd.f32 %v638_v63, %v928_v31 }
  0x76   :  { %v639_v9 = vadd.f32 %v572_v1, %v494_v2 }
  0x77   :  { %vm732_vm0 = vcmp.lt.f32.partialorder %v700_v5, 0.5  ;;  %v702_v10 = vadd.f32 %v670_v7, %v928_v31  ;;  %vm736_vm15 = vcmp.lt.f32.partialorder %v672_v8, 0.5 }
  0x78   :  { %v865_v11 = vsel %vm732_vm0, 1.0, %v872_v3  ;;  %v701_v13 = vadd.f32 %v669_v4, %v639_v9  ;;  %v671_v14 = vadd.f32 %v639_v9, %v637_v45  ;;  %v869_v15 = vsel %vm736_vm15, 1.0, %v872_v3 }
  0x79   :  { %829 = vst.msk [vmem:[%s1384_s1 + $0xd0] sm:$0xff] %vm802_vm3, %v865_v11  ;;  %vm734_vm1 = vcmp.lt.f32.partialorder %v702_v10, 0.5  ;;  %833 = vst.msk [vmem:[%s1384_s1 + $0xf0] sm:$0xff] %vm802_vm3, %v869_v15  ;;  %v673_v31 = vadd.f32 %v639_v9, %v931_v35 }
  0x7a   :  { %vm733_vm2 = vcmp.lt.f32.partialorder %v701_v13, 0.5  ;;  %v867_v16 = vsel %vm734_vm1, 1.0, %v872_v3  ;;  %v703_v17 = vadd.f32 %v671_v14, %v931_v35 }
  0x7b   :  { %v866_v18 = vsel %vm733_vm2, 1.0, %v872_v3  ;;  %831 = vst.msk [vmem:[%s1384_s1 + $0xe0] sm:$0xff] %vm802_vm3, %v867_v16  ;;  %vm737_vm4 = vcmp.lt.f32.partialorder %v673_v31, 0.5 }
  0x7c   :  { %830 = vst.msk [vmem:[%s1384_s1 + $0xd8] sm:$0xff] %vm802_vm3, %v866_v18  ;;  %vm735_vm6 = vcmp.lt.f32.partialorder %v703_v17, 0.5  ;;  %v870_v19 = vsel %vm737_vm4, 1.0, %v872_v3 }
  0x7d   :  { %v868_v20 = vsel %vm735_vm6, 1.0, %v872_v3  ;;  %834 = vst.msk [vmem:[%s1384_s1 + $0xf8] sm:$0xff] %vm802_vm3, %v870_v19 }
  0x7e   :  { %832 = vst.msk [vmem:[%s1384_s1 + $0xe8] sm:$0xff] %vm802_vm3, %v868_v20 }

</bundles_post_ra>
